<compile_context>
chip_gen: v7x
topology: tpu7x:2x2x1
jax: 0.10.0
libtpu: 0.0.40
codegen_flags: <defaults>
</compile_context>

<pallas_src>
import numpy as np
import jax
import jax.numpy as jnp
from jax.experimental import pallas as pl
from jax.experimental.pallas import tpu as pltpu

# ----------------- config (consistent with the module's structural constraints) ----
TCN_LAYER_NUM = 2
TCN_KERNEL_SIZE = 3
TCN_INPUT_DIM = 4          # must equal NUM_OUTPUT_TS (SepDense broadcast over channels)
TCN_FILTER_NUM = 8
WINDOW_SIZE = 32
FORECAST_HORIZON = 32      # must equal WINDOW_SIZE (query @ key^T inside DotAttention)
NUM_OUTPUT_TS = 4
BATCH = 2


# --------------------------------- kernel -------------------------------------
def matcn_value_kernel(x_ref, wv_ref, sum_ref, o_ref):
    """Live path of MATCNModel.forward as one lane-dense MXU pass.

    x_ref:   (B, C*W)    raw input with channels flattened into the lane axis.
    wv_ref:  (C*W, C*W)  block-diagonal packing of the per-channel value weights.
    sum_ref: (C*W, W)    channel-summation matrix (stacked identities).
    o_ref:   (B, W)      model output.
    """
    # value (per-channel) for all channels & batch rows in a single 128-lane matmul.
    val = jnp.dot(x_ref[...], wv_ref[...], preferred_element_type=jnp.float32)
    val = jnp.maximum(val, 0.0)                       # SepDenseLayer ReLU
    # softmax over the singleton axis is identically 1.0 -> attention output is the
    # plain channel sum; done as a second tiny matmul to avoid cross-lane shuffles.
    o_ref[...] = jnp.dot(val, sum_ref[...], preferred_element_type=jnp.float32)


# --------------------------------- wrapper ------------------------------------
def _matcn_forward_impl(x_ncw, wv_packed, sum_mat):
    """x_ncw: (B, C, W) float32, native PyTorch NCW layout.  Returns (B, W)."""
    b, c, w = x_ncw.shape
    x_flat = x_ncw.reshape(b, c * w)          # contiguous reshape: free under jit
    return pl.pallas_call(
        matcn_value_kernel,
        out_shape=jax.ShapeDtypeStruct((b, w), jnp.float32),
        # No grid: whole problem is one block; memory_space-only BlockSpecs skip
        # the block-pipeline machinery entirely (no double buffering).
        in_specs=[pl.BlockSpec(memory_space=pltpu.MemorySpace.VMEM),
                  pl.BlockSpec(memory_space=pltpu.MemorySpace.VMEM),
                  pl.BlockSpec(memory_space=pltpu.MemorySpace.VMEM)],
        out_specs=pl.BlockSpec(memory_space=pltpu.MemorySpace.VMEM),
    )(x_flat, wv_packed, sum_mat)


matcn_forward = jax.jit(_matcn_forward_impl)   # single dispatch for the whole live path


# ------------------------------ weight packing ---------------------------------
def pack_value_weights(wv):
    """wv: (C, W, W) per-channel value weights -> block-diagonal (C*W, C*W)."""
    c, w, _ = wv.shape
    packed = np.zeros((c * w, c * w), dtype=np.float32)
    wv_np = np.asarray(wv)
    for i in range(c):
        packed[i * w:(i + 1) * w, i * w:(i + 1) * w] = wv_np[i]
    return jnp.asarray(packed)


def channel_sum_matrix(c, w):
    """(C*W, W) matrix summing C groups of W lanes: out[:, j] = sum_c val[:, c*W+j]."""
    s = np.zeros((c * w, w), dtype=np.float32)
    eye = np.eye(w, dtype=np.float32)
    for i in range(c):
        s[i * w:(i + 1) * w, :] = eye
    return jnp.asarray(s)


# ------------------------------ parameter init --------------------------------
def weight_norm_effective(v, g):
    # v: (Cout, Cin, k), g: (Cout,) -> g * v / ||v||  (norm over dims 1,2)
    norm = jnp.sqrt(jnp.sum(v * v, axis=(1, 2), keepdims=True))
    return g[:, None, None] * v / norm


def adaptive_avg_pool_matrix(l_in, l_out):
    """PyTorch AdaptiveAvgPool1d as a (l_out, l_in) averaging matrix."""
    p = np.zeros((l_out, l_in), dtype=np.float32)
    for i in range(l_out):
        start = (i * l_in) // l_out
        end = -((-(i + 1) * l_in) // l_out)  # ceil((i+1)*l_in/l_out)
        p[i, start:end] = 1.0 / (end - start)
    return jnp.asarray(p)


def init_params(key):
    k, f, c = TCN_KERNEL_SIZE, TCN_FILTER_NUM, TCN_INPUT_DIM
    n, w, h = NUM_OUTPUT_TS, WINDOW_SIZE, FORECAST_HORIZON
    dilations = tuple([1] + [2 ** i for i in range(1, TCN_LAYER_NUM - 1)]
                      + [2 ** (TCN_LAYER_NUM - 1)])
    in_dims = [c] + [f] * (len(dilations) - 1)

    keys = iter(jax.random.split(key, 12 * len(dilations) + 16))

    def nrm(shape, std=0.1):
        return std * jax.random.normal(next(keys), shape, jnp.float32)

    ref_blocks = []
    for d, cin in zip(dilations, in_dims):
        w1 = weight_norm_effective(nrm((f, cin, k)), 1.0 + nrm((f,)))
        b1 = nrm((f,))
        w2 = weight_norm_effective(nrm((f, f, k)), 1.0 + nrm((f,)))
        b2 = nrm((f,))
        w3 = weight_norm_effective(nrm((f, cin, 1)), 1.0 + nrm((f,)))
        b3 = nrm((f,))
        ref_blocks.append((w1, b1, w2, b2, w3, b3))

    wd = weight_norm_effective(nrm((n, f, k)), 1.0 + nrm((n,)))
    bd = nrm((n,))
    wq = nrm((h, n))                 # torch Linear weight (out, in)
    bq = nrm((h,))
    wk = nrm((n, w, w), std=0.05)
    bk = nrm((n, w), std=0.05)
    wv = nrm((n, w, w), std=0.05)

    # Kernel-side parameters: only the live value path, pre-packed lane-dense.
    params = dict(wv_packed=pack_value_weights(wv), sum_mat=channel_sum_matrix(n, w))
    ref_p = dict(dilations=dilations, blocks=ref_blocks,
                 wd=wd, bd=bd, wq=wq, bq=bq, wk=wk, bk=bk, wv=wv)
    return params, ref_p


# ------------------- pure-JAX reference: FULL original forward -----------------
def conv1d_ncw(x, w, b, dilation):
    k = w.shape[2]
    lout = x.shape[2] - dilation * (k - 1)
    out = jnp.zeros((x.shape[0], w.shape[0], lout), jnp.float32)
    for j in range(k):
        out = out + jnp.einsum("bcl,oc->bol",
                               x[:, :, j * dilation: j * dilation + lout], w[:, :, j])
    return out + b[None, :, None]


def reference_forward(x, ref_p):
    # TCNStack of BasicTCNBlocks (dropout = identity at inference)
    hcur = x
    for (w1, b1, w2, b2, w3, b3), d in zip(ref_p["blocks"], ref_p["dilations"]):
        a = jnp.maximum(conv1d_ncw(hcur, w1, b1, d), 0.0)
        a = jnp.maximum(conv1d_ncw(a, w2, b2, d), 0.0)
        res = conv1d_ncw(hcur, w3, b3, d)
        pt = adaptive_avg_pool_matrix(res.shape[-1], a.shape[-1])
        res = jnp.einsum("bcl,ol->bco", res, pt)
        hcur = res + a
    # DownsampleLayerWithAttention
    t = conv1d_ncw(hcur, ref_p["wd"], ref_p["bd"], 1)
    gap = jnp.mean(t, axis=2)                                   # (B, N)
    query = gap @ ref_p["wq"].T + ref_p["bq"]                   # (B, H)
    key = jnp.maximum(jnp.einsum("bcw,cwo->bco", x, ref_p["wk"]) + ref_p["bk"][None], 0.0)
    value = jnp.maximum(jnp.einsum("bcw,cwo->bco", x, ref_p["wv"]), 0.0)
    scores = jnp.einsum("bw,bnw->bn", query, key) / jnp.sqrt(jnp.float32(WINDOW_SIZE))
    dist = jax.nn.softmax(scores[:, None, :], axis=1)           # softmax over singleton dim
    return jnp.einsum("bon,bnw->bow", dist, value)[:, 0, :]


# ----------------------------------- main --------------------------------------
if __name__ == "__main__":
    root = jax.random.PRNGKey(0)
    kx, kp = jax.random.split(root)
    x = jax.random.normal(kx, (BATCH, TCN_INPUT_DIM, WINDOW_SIZE), jnp.float32)

    params, ref_p = init_params(kp)
    out = matcn_forward(x, params["wv_packed"], params["sum_mat"])
    out = jax.block_until_ready(out)

    ref = reference_forward(x, ref_p)
    assert out.shape == (BATCH, WINDOW_SIZE)
    np.testing.assert_allclose(np.asarray(out), np.asarray(ref), rtol=2e-3, atol=2e-3)
    print("KERNEL_OK")
</pallas_src>

<mosaic_0001>
module attributes {stable_mosaic.version = 11 : i64} {
  func.func @matcn_value_kernel(%arg0: memref<2x128xf32, #tpu.memory_space<vmem>>, %arg1: memref<128x128xf32, #tpu.memory_space<vmem>>, %arg2: memref<128x32xf32, #tpu.memory_space<vmem>>, %arg3: memref<2x32xf32, #tpu.memory_space<vmem>>) attributes {dimension_semantics = [], scalar_prefetch = 0 : i64, scratch_operands = 0 : i64, tpu.core_type = #tpu.core_type<tc>} {
    %c0 = arith.constant 0 : index
    %c0_0 = arith.constant 0 : index
    %0 = vector.load %arg0[%c0, %c0_0] : memref<2x128xf32, #tpu.memory_space<vmem>>, vector<2x128xf32>
    %c0_1 = arith.constant 0 : index
    %c0_2 = arith.constant 0 : index
    %1 = vector.load %arg1[%c0_1, %c0_2] : memref<128x128xf32, #tpu.memory_space<vmem>>, vector<128x128xf32>
    %cst = arith.constant dense<0.000000e+00> : vector<2x128xf32>
    %2 = tpu.matmul %0, %1, %cst {dimension_numbers = #tpu.dot_dimension_numbers<[1], [0], [0], [1], [0, 0, 1, 1], [], []>} : vector<2x128xf32>, vector<128x128xf32>, vector<2x128xf32> -> vector<2x128xf32>
    %cst_3 = arith.constant 0.000000e+00 : f32
    %3 = vector.broadcast %cst_3 : f32 to vector<2x128xf32>
    %4 = arith.maximumf %2, %3 : vector<2x128xf32>
    %c0_4 = arith.constant 0 : index
    %c0_5 = arith.constant 0 : index
    %5 = vector.load %arg2[%c0_4, %c0_5] : memref<128x32xf32, #tpu.memory_space<vmem>>, vector<128x32xf32>
    %cst_6 = arith.constant dense<0.000000e+00> : vector<2x32xf32>
    %6 = tpu.matmul %4, %5, %cst_6 {dimension_numbers = #tpu.dot_dimension_numbers<[1], [0], [0], [1], [0, 0, 1, 1], [], []>} : vector<2x128xf32>, vector<128x32xf32>, vector<2x32xf32> -> vector<2x32xf32>
    %c0_7 = arith.constant 0 : index
    %c0_8 = arith.constant 0 : index
    %7 = vector.load %arg3[%c0_7, %c0_8] : memref<2x32xf32, #tpu.memory_space<vmem>>, vector<2x32xf32>
    tpu.vector_store %arg3[%c0_7, %c0_8], %6 {strides = array<i32>} : memref<2x32xf32, #tpu.memory_space<vmem>>, vector<2x32xf32>,
    return
  }
}

</mosaic_0001>

<bundles_post_ra>
// kernel: _matcn_forward_impl.1
= control target key start
LH: loop header
LB: loop body
LE: loop exit
PB: predicated region body
PF: predicated region fallthrough
CT: control target
= control target key end

     0   :  { %v385_v3 = vmov 0.0|0.0   ;;  %vm386_vm0 = vmmov 0   ;;  %v387_v6 = vmov 0.0   ;;  %s536_s0 = inlined_call_operand.vmem [shape: f32[2,128], index: 0, kind: input, shape index: {}]   ;;  %s537_s1 = inlined_call_operand.vmem [shape: f32[128,128], index: 1, kind: input, shape index: {}]   ;;  %s538_s2 = inlined_call_operand.vmem [shape: f32[128,32], index: 2, kind: input, shape index: {}]   ;;  %s539_s3 = inlined_call_operand.hbm [shape: f32[2,32], index: 3, kind: output, shape index: {}]  }
   0x1   :  { %v16_v0 = vld [vmem:[%s537_s1] sm:$0xff]  ;;  %v17_v1 = vld [vmem:[%s537_s1 + $0x8] sm:$0xff]  ;;  %v18_v2 = vld [vmem:[%s537_s1 + $0x10] sm:$0xff]  ;;  %309 = vmatprep.subr.bf16.mxu0 %v385_v3  ;;  %271 = vmatprep.mubr.msk.f32.mxu0 %vm386_vm0, %v387_v6 }
   0x2   :  { %v310_v4 = vpack.c.bf16 %v17_v1, %v16_v0  ;;  %v19_v5 = vld [vmem:[%s537_s1 + $0x18] sm:$0xff]  ;;  %333 = vmatprep.subr.bf16.mxu1 %v385_v3  ;;  %306 = vmatprep.mubr.msk.f32.mxu1 %vm386_vm0, %v387_v6  ;;  %v20_v8 = vld [vmem:[%s537_s1 + $0x20] sm:$0xff]  ;;  %v21_v9 = vld [vmem:[%s537_s1 + $0x28] sm:$0xff] }
   0x3   :  { %v313_v7 = vpack.c.bf16 %v19_v5, %v18_v2  ;;  %v103_v10 = vld [vmem:[%s538_s2] sm:$0xff]  ;;  %v104_v11 = vld [vmem:[%s538_s2 + $0x8] sm:$0xff]  ;;  %v105_v12 = vld [vmem:[%s538_s2 + $0x10] sm:$0xff]  ;;  %v316_v14 = vpack.c.bf16 %v21_v9, %v20_v8 }
   0x4   :  { %311 = vmatpush3.bf16.msra.mxu0 %v310_v4  ;;  %v106_v13 = vld [vmem:[%s538_s2 + $0x18] sm:$0xff]  ;;  %v334_v15 = vpack.c.bf16 %v104_v11, %v103_v10  ;;  %v22_v16 = vld [vmem:[%s537_s1 + $0x30] sm:$0xff]  ;;  %v107_v19 = vld [vmem:[%s538_s2 + $0x20] sm:$0xff] }
   0x5   :  { %312 = vmatprep.subr.bf16.mxu0 %v385_v3  ;;  %v23_v17 = vld [vmem:[%s537_s1 + $0x38] sm:$0xff]  ;;  %v337_v18 = vpack.c.bf16 %v106_v13, %v105_v12  ;;  %v108_v20 = vld [vmem:[%s538_s2 + $0x28] sm:$0xff] }
   0x6   :  { %335 = vmatpush3.bf16.msra.mxu1 %v334_v15 }
   0x7   :  { %336 = vmatprep.subr.bf16.mxu1 %v385_v3 }
   0x8   :  { %314 = vmatpush3.bf16.msra.mxu0 %v313_v7 }
   0x9   :  { %315 = vmatprep.subr.bf16.mxu0 %v385_v3 }
   0xa   :  { %8 = vsyncpa [#allocation3], 0  ;;  %v319_v21 = vpack.c.bf16 %v23_v17, %v22_v16  ;;  %v24_v22 = vld [vmem:[%s537_s1 + $0x40] sm:$0xff]  ;;  %v25_v23 = vld [vmem:[%s537_s1 + $0x48] sm:$0xff]  ;;  %338 = vmatpush3.bf16.msra.mxu1 %v337_v18  ;;  %v340_v24 = vpack.c.bf16 %v108_v20, %v107_v19  ;;  %s388_s23 = smov [#allocation2]   ;;  %vm189_vm1 = vcmask 254976  }
   0xb   :  { %339 = vmatprep.subr.bf16.mxu1 %v385_v3  ;;  %v109_v25 = vld [vmem:[%s538_s2 + $0x30] sm:$0xff]  ;;  %v110_v26 = vld [vmem:[%s538_s2 + $0x38] sm:$0xff]  ;;  %v322_v27 = vpack.c.bf16 %v25_v23, %v24_v22  ;;  %v111_v31 = vld [vmem:[%s538_s2 + $0x40] sm:$0xff] }
   0xc   :  { %317 = vmatpush3.bf16.msra.mxu0 %v316_v14  ;;  %v26_v28 = vld [vmem:[%s537_s1 + $0x50] sm:$0xff]  ;;  %v27_v29 = vld [vmem:[%s537_s1 + $0x58] sm:$0xff]  ;;  %v343_v30 = vpack.c.bf16 %v110_v26, %v109_v25  ;;  %v112_v32 = vld [vmem:[%s538_s2 + $0x48] sm:$0xff] }
   0xd   :  { %318 = vmatprep.subr.bf16.mxu0 %v385_v3  ;;  %v325_v33 = vpack.c.bf16 %v27_v29, %v26_v28  ;;  %v28_v34 = vld [vmem:[%s537_s1 + $0x60] sm:$0xff]  ;;  %v29_v35 = vld [vmem:[%s537_s1 + $0x68] sm:$0xff]  ;;  %v346_v36 = vpack.c.bf16 %v112_v32, %v111_v31  ;;  %v113_v37 = vld [vmem:[%s538_s2 + $0x50] sm:$0xff] }
   0xe   :  { %341 = vmatpush3.bf16.msra.mxu1 %v340_v24  ;;  %v114_v38 = vld [vmem:[%s538_s2 + $0x58] sm:$0xff]  ;;  %v328_v39 = vpack.c.bf16 %v29_v35, %v28_v34  ;;  %v30_v40 = vld [vmem:[%s537_s1 + $0x70] sm:$0xff]  ;;  %v115_v43 = vld [vmem:[%s538_s2 + $0x60] sm:$0xff] }
   0xf   :  { %342 = vmatprep.subr.bf16.mxu1 %v385_v3  ;;  %v31_v41 = vld [vmem:[%s537_s1 + $0x78] sm:$0xff]  ;;  %v349_v42 = vpack.c.bf16 %v114_v38, %v113_v37  ;;  %v116_v44 = vld [vmem:[%s538_s2 + $0x68] sm:$0xff]  ;;  %v15_v47 = vld [vmem:[%s536_s0] sm:$0x3]  ;;  %s197_s0 = sshll.u32 %s388_s23, 4  ;;  %s198_s0 = int_to_ptr.vmem [resolvable:$true] %s197_s0 }
  0x10   :  { %320 = vmatpush3.bf16.msra.mxu0 %v319_v21  ;;  %v331_v45 = vpack.c.bf16 %v31_v41, %v30_v40  ;;  %v352_v46 = vpack.c.bf16 %v116_v44, %v115_v43  ;;  %v117_v48 = vld [vmem:[%s538_s2 + $0x70] sm:$0xff]  ;;  %v118_v49 = vld [vmem:[%s538_s2 + $0x78] sm:$0xff]  ;;  %s361_s24 = scalar_lea.vmem %s198_s0, 32  ;;  %p366_p1 = scmp.lt.s32.totalorder %s198_s0, %s198_s0 }
  0x11   :  { %321 = vmatprep.subr.bf16.mxu0 %v385_v3  ;;  %v355_v50 = vpack.c.bf16 %v118_v49, %v117_v48  ;;  %p362_p0 = scmp.ne.s32.totalorder %s198_s0, %s361_s24  ;;  %p367_p2 = scmp.lt.s32.totalorder %s361_s24, %s361_s24 }
  0x12   :  { %344 = vmatpush3.bf16.msra.mxu1 %v343_v30 }
  0x13   :  { %345 = vmatprep.subr.bf16.mxu1 %v385_v3  ;;  %p368_p3 = por %p367_p2, %p366_p1 }
  0x14   :  { %323 = vmatpush3.bf16.msra.mxu0 %v322_v27 }
  0x15   :  { %324 = vmatprep.subr.bf16.mxu0 %v385_v3  ;;  %p369_p4 = pnand %p368_p3, %p362_p0 }
  0x16   :  { %347 = vmatpush3.bf16.msra.mxu1 %v346_v36 }
  0x17   :  { %348 = vmatprep.subr.bf16.mxu1 %v385_v3 }
  0x18   :  { %326 = vmatpush3.bf16.msra.mxu0 %v325_v33 }
  0x19   :  { %327 = vmatprep.subr.bf16.mxu0 %v385_v3 }
  0x1a   :  { %350 = vmatpush3.bf16.msra.mxu1 %v349_v42 }
  0x1b   :  { %351 = vmatprep.subr.bf16.mxu1 %v385_v3 }
  0x1c   :  { %329 = vmatpush3.bf16.msra.mxu0 %v328_v39 }
  0x1d   :  { %330 = vmatprep.subr.bf16.mxu0 %v385_v3 }
  0x1e   :  { %353 = vmatpush3.bf16.msra.mxu1 %v352_v46 }
  0x1f   :  { %354 = vmatprep.subr.bf16.mxu1 %v385_v3 }
  0x20   :  { %332 = vmatpush3.bf16.msra.mxu0 %v331_v45 }
  0x22   :  { %356 = vmatpush3.bf16.msra.mxu1 %v355_v50 }
  0x23   :  { %272 = vmatmul.mubr.f32.vlgmr.msra.gmra.mrb[0].mxu0 %v15_v47 }
  0xf6   :  { %v98_v51 = vpop.f32.mrb[0].mxu0 }
  0xf7   :  { %v102_v52 = vmax.f32 %v98_v51, 0.0  ;;  %v273_v53 = vpop.f32.mrb[1].mxu0 }
  0xf9   :  { %307 = vmatmul.mubr.f32.vlgmr.msra.gmra.mrb[0].mxu1 %v102_v52 }
 0x1cc   :  { %v185_v54 = vpop.f32.mrb[0].mxu1 }
 0x1cd   :  { %190 = vst.msk [vmem:[#allocation2] sm:$0x3] %vm189_vm1, %v185_v54  ;;  %v308_v55 = vpop.f32.mrb[1].mxu1 }
 0x1ce   :  { %372 = shalt.err (!%p369_p4)
}
 0x1cf   :  { %s373_s26 = scalar_lea.hbm %s539_s3, 32 }
 0x1d0   :  { %p374_p5 = scmp.ne.s32.totalorder %s539_s3, %s373_s26  ;;  %p377_p6 = scmp.lt.u32.totalorder %s373_s26, %s539_s3 }
 0x1d2   :  { %p379_p7 = pnand %p377_p6, %p374_p5 }
 0x1d4   :  { %382 = shalt.err (!%p379_p7)
}
 0x1d5   :  { %200 = dma.vmem_to_hbm [thread:$0]  %s198_s0, 32, %s539_s3, [#allocation3]  }
 0x1d6   :  { %383 = dma.done.wait [#allocation3], 32  }
 0x1d7   :  { %384 = vsyncadd [#allocation3], 4294967264 }
 0x1d8   :  { %204 = vsyncpa [#allocation3], 1 }

</bundles_post_ra>
